<compile_context>
chip_gen: v5e
topology: v5e:2x2
jax: 0.10.0
libtpu: 0.0.40
codegen_flags: <defaults>
</compile_context>

<pallas_src>
import functools

import jax
import jax.numpy as jnp
from jax.experimental import pallas as pl
from jax.experimental.pallas import tpu as pltpu  # noqa: F401  (TPU backend)

NEG_SLOPE = 0.01  # nn.LeakyReLU default


def _leaky_relu(x):
    return jnp.where(x > 0, x, NEG_SLOPE * x)


def _att_kernel(emb_ref, wv_ref, w1_ref, w2_ref, out_ref, *, n_nodes):
    # emb_ref: (B*N, D)  bf16  — all batch elements, flattened over (batch, node)
    # wv_ref : (D, D)    bf16  — value projection
    # w1_ref : (D, 1)    bf16  — "self"/query half of the attention vector
    # w2_ref : (1, D)    bf16  — "neighbor" half of the attention vector
    # out_ref: (B, N-1, D) f32
    N = n_nodes
    BN, D = emb_ref.shape
    B = BN // N

    emb2d = emb_ref[...]                                              # [B*N, D] bf16

    # value_j = e_j @ Wv        (bf16 MXU, f32 accumulate)
    value_all = jnp.dot(emb2d, wv_ref[...],
                        preferred_element_type=jnp.float32)           # [B*N, D] f32
    # s1_i = e_i . w1  — produced directly in the [B*N, 1] column layout.
    s1_all = jnp.dot(emb2d, w1_ref[...],
                     preferred_element_type=jnp.float32)              # [B*N, 1] f32
    # s2_j = e_j . w2  — produced directly in the [1, B*N] row (lane) layout.
    s2_all = jax.lax.dot_general(
        w2_ref[...], emb2d, (((1,), (1,)), ((), ())),
        preferred_element_type=jnp.float32)                           # [1, B*N] f32

    # Cast once for the second MXU pass (alphas @ value).
    value_bf = value_all.astype(jnp.bfloat16)                         # [B*N, D] bf16

    # B is tiny and static -> fully unrolled Python loop.
    # (See TODO at top: fori_loop / grid axis once B grows.)
    for b in range(B):
        value_b = value_bf[b * N:(b + 1) * N, :]                      # [N, D]
        # Skip query row 0 here (the module's [:, 1:, :]) so the dropped row
        # never pays exp/softmax/matmul cost and att lands as [N-1, D].
        s1_b = s1_all[b * N + 1:(b + 1) * N, :]                       # [N-1, 1] f32
        s2_b = s2_all[:, b * N:(b + 1) * N]                           # [1, N]   f32

        # scores[i, j] = LeakyReLU(e_i.w1 + e_j.w2)       (f32 VPU work)
        scores = _leaky_relu(s1_b + s2_b)                             # [N-1, N]

        # softmax over the neighbor axis j (== PyTorch dim=-2 of [B, N, N, 1])
        m = jnp.max(scores, axis=-1, keepdims=True)
        p = jnp.exp(scores - m)
        alphas = p * pl.reciprocal(jnp.sum(p, axis=-1, keepdims=True),
                                   approx=True)                       # EUP slot

        # att[i] = sum_j alphas[i, j] * value[j]   (bf16 MXU, f32 accumulate)
        att = jnp.dot(alphas.astype(jnp.bfloat16), value_b,
                      preferred_element_type=jnp.float32)             # [N-1, D]

        out_ref[b] = _leaky_relu(att).astype(out_ref.dtype)           # [N-1, D]


@jax.jit
def att0_1_forward(embeddings, w_att1, w_att2, w_value):
    """embeddings: [B, N, D] float32; weights already bf16 -> [B, N-1, D] f32."""
    B, N, D = embeddings.shape
    # Free metadata reshape + one cast (halves the embedding DMA into the
    # kernel); fused into this jitted forward next to the custom call.
    emb2d = embeddings.reshape(B * N, D).astype(jnp.bfloat16)

    # Single grid step: the whole problem fits one VMEM block; a grid would
    # only add per-step pipeline/DMA overhead at these sizes.
    return pl.pallas_call(
        functools.partial(_att_kernel, n_nodes=N),
        out_shape=jax.ShapeDtypeStruct((B, N - 1, D), jnp.float32),
    )(emb2d, w_value, w_att1, w_att2)


def init_att0_1_params(key, em_dim):
    """One-time parameter init: weights stored bf16 (no per-call prep ops)."""
    k1, k2, kv = jax.random.split(key, 3)
    w_att1 = (jax.random.normal(k1, (em_dim, 1), jnp.float32) * 0.1).astype(jnp.bfloat16)
    w_att2 = (jax.random.normal(k2, (1, em_dim), jnp.float32) * 0.1).astype(jnp.bfloat16)
    w_value = (jax.random.normal(kv, (em_dim, em_dim), jnp.float32) * 0.1).astype(jnp.bfloat16)
    return w_att1, w_att2, w_value


def _reference(embeddings, w_att1, w_att2, w_value):
    """Pure-JAX f32 reference of the same (inferred) forward pass."""
    value = embeddings @ w_value                                      # [B, N, D]
    s1 = embeddings @ w_att1                                          # [B, N, 1]
    s2 = jnp.einsum("od,bnd->bon", w_att2, embeddings)                # [B, 1, N]
    scores = _leaky_relu(s1 + s2)                                     # [B, N, N]
    alphas = jax.nn.softmax(scores, axis=-1)                          # softmax over j
    att = jnp.einsum("bij,bjd->bid", alphas, value)                   # [B, N, D]
    return _leaky_relu(att[:, 1:, :])


if __name__ == "__main__":
    B, N, D = 2, 8, 32  # batch, num_fields (incl. the field dropped by [:,1:,:]), em_dim

    key = jax.random.PRNGKey(0)
    k_emb, k_par = jax.random.split(key, 2)

    embeddings = jax.random.normal(k_emb, (B, N, D), dtype=jnp.float32)
    w_att1, w_att2, w_value = init_att0_1_params(k_par, D)

    out = att0_1_forward(embeddings, w_att1, w_att2, w_value)
    out = jax.block_until_ready(out)

    # Reference uses the same (bf16-quantized) weights upcast to f32, so the
    # remaining diff is only bf16 MXU-operand rounding + approx reciprocal.
    ref = _reference(embeddings,
                     w_att1.astype(jnp.float32),
                     w_att2.astype(jnp.float32),
                     w_value.astype(jnp.float32))

    assert out.shape == (B, N - 1, D), out.shape
    # bf16 MXU operands (f32 accumulate) + approx softmax reciprocal => ~1e-2 tol.
    assert jnp.allclose(out, ref, atol=2e-2, rtol=2e-2), (
        "mismatch vs reference: max abs diff = %f"
        % float(jnp.max(jnp.abs(out - ref))))

    print("KERNEL_OK")
</pallas_src>

<mosaic_0001>
module attributes {stable_mosaic.version = 11 : i64} {
  func.func @_att_kernel(%arg0: memref<16x32xbf16, #tpu.memory_space<vmem>>, %arg1: memref<32x32xbf16, #tpu.memory_space<vmem>>, %arg2: memref<32x1xbf16, #tpu.memory_space<vmem>>, %arg3: memref<1x32xbf16, #tpu.memory_space<vmem>>, %arg4: memref<2x7x32xf32, #tpu.memory_space<vmem>>) attributes {dimension_semantics = [], scalar_prefetch = 0 : i64, scratch_operands = 0 : i64, tpu.core_type = #tpu.core_type<tc>} {
    %c0 = arith.constant 0 : index
    %c0_0 = arith.constant 0 : index
    %0 = vector.load %arg0[%c0, %c0_0] : memref<16x32xbf16, #tpu.memory_space<vmem>>, vector<16x32xbf16>
    %c0_1 = arith.constant 0 : index
    %c0_2 = arith.constant 0 : index
    %1 = vector.load %arg1[%c0_1, %c0_2] : memref<32x32xbf16, #tpu.memory_space<vmem>>, vector<32x32xbf16>
    %cst = arith.constant dense<0.000000e+00> : vector<16x32xf32>
    %2 = tpu.matmul %0, %1, %cst {dimension_numbers = #tpu.dot_dimension_numbers<[1], [0], [0], [1], [0, 0, 1, 1], [], []>} : vector<16x32xbf16>, vector<32x32xbf16>, vector<16x32xf32> -> vector<16x32xf32>
    %c0_3 = arith.constant 0 : index
    %c0_4 = arith.constant 0 : index
    %3 = vector.load %arg2[%c0_3, %c0_4] : memref<32x1xbf16, #tpu.memory_space<vmem>>, vector<32x1xbf16>
    %cst_5 = arith.constant dense<0.000000e+00> : vector<16x1xf32>
    %4 = tpu.matmul %0, %3, %cst_5 {dimension_numbers = #tpu.dot_dimension_numbers<[1], [0], [0], [1], [0, 0, 1, 1], [], []>} : vector<16x32xbf16>, vector<32x1xbf16>, vector<16x1xf32> -> vector<16x1xf32>
    %c0_6 = arith.constant 0 : index
    %c0_7 = arith.constant 0 : index
    %5 = vector.load %arg3[%c0_6, %c0_7] : memref<1x32xbf16, #tpu.memory_space<vmem>>, vector<1x32xbf16>
    %cst_8 = arith.constant dense<0.000000e+00> : vector<1x16xf32>
    %6 = tpu.matmul %5, %0, %cst_8 {dimension_numbers = #tpu.dot_dimension_numbers<[1], [1], [0], [0], [0, 0, 1, 0], [], []>} : vector<1x32xbf16>, vector<16x32xbf16>, vector<1x16xf32> -> vector<1x16xf32>
    %7 = arith.truncf %2 : vector<16x32xf32> to vector<16x32xbf16>
    %8 = vector.extract_strided_slice %7 {offsets = [0, 0], sizes = [8, 32], strides = [1, 1]} : vector<16x32xbf16> to vector<8x32xbf16>
    %9 = vector.extract_strided_slice %4 {offsets = [1, 0], sizes = [7, 1], strides = [1, 1]} : vector<16x1xf32> to vector<7x1xf32>
    %10 = vector.extract_strided_slice %6 {offsets = [0, 0], sizes = [1, 8], strides = [1, 1]} : vector<1x16xf32> to vector<1x8xf32>
    %11 = vector.broadcast %9 : vector<7x1xf32> to vector<7x8xf32>
    %12 = vector.broadcast %10 : vector<1x8xf32> to vector<7x8xf32>
    %13 = arith.addf %11, %12 : vector<7x8xf32>
    %cst_9 = arith.constant 0.000000e+00 : f32
    %14 = vector.broadcast %cst_9 : f32 to vector<7x8xf32>
    %15 = arith.cmpf ogt, %13, %14 : vector<7x8xf32>
    %cst_10 = arith.constant 0.00999999977 : f32
    %16 = vector.broadcast %cst_10 : f32 to vector<7x8xf32>
    %17 = arith.mulf %16, %13 : vector<7x8xf32>
    %18 = arith.select %15, %13, %17 : vector<7x8xi1>, vector<7x8xf32>
    %cst_11 = arith.constant dense<0xFF800000> : vector<7xf32>
    %19 = vector.multi_reduction <maximumf>, %18, %cst_11 [1] : vector<7x8xf32> to vector<7xf32>
    %20 = vector.shape_cast %19 : vector<7xf32> to vector<7x1xf32>
    %21 = vector.broadcast %20 : vector<7x1xf32> to vector<7x8xf32>
    %22 = arith.subf %18, %21 : vector<7x8xf32>
    %23 = math.exp %22 : vector<7x8xf32>
    %cst_12 = arith.constant dense<0.000000e+00> : vector<7xf32>
    %24 = vector.multi_reduction <add>, %23, %cst_12 [1] : vector<7x8xf32> to vector<7xf32>
    %25 = vector.shape_cast %24 : vector<7xf32> to vector<7x1xf32>
    %26 = tpu.reciprocal %25 {approx = true} : vector<7x1xf32> -> vector<7x1xf32>
    %27 = vector.broadcast %26 : vector<7x1xf32> to vector<7x8xf32>
    %28 = arith.mulf %23, %27 : vector<7x8xf32>
    %29 = arith.truncf %28 : vector<7x8xf32> to vector<7x8xbf16>
    %cst_13 = arith.constant dense<0.000000e+00> : vector<7x32xf32>
    %30 = tpu.matmul %29, %8, %cst_13 {dimension_numbers = #tpu.dot_dimension_numbers<[1], [0], [0], [1], [0, 0, 1, 1], [], []>} : vector<7x8xbf16>, vector<8x32xbf16>, vector<7x32xf32> -> vector<7x32xf32>
    %cst_14 = arith.constant 0.000000e+00 : f32
    %31 = vector.broadcast %cst_14 : f32 to vector<7x32xf32>
    %32 = arith.cmpf ogt, %30, %31 : vector<7x32xf32>
    %cst_15 = arith.constant 0.00999999977 : f32
    %33 = vector.broadcast %cst_15 : f32 to vector<7x32xf32>
    %34 = arith.mulf %33, %30 : vector<7x32xf32>
    %35 = arith.select %32, %30, %34 : vector<7x32xi1>, vector<7x32xf32>
    %c0_16 = arith.constant 0 : index
    %c0_17 = arith.constant 0 : index
    %c0_18 = arith.constant 0 : index
    %36 = vector.load %arg4[%c0_16, %c0_17, %c0_18] : memref<2x7x32xf32, #tpu.memory_space<vmem>>, vector<1x7x32xf32>
    %37 = vector.shape_cast %36 : vector<1x7x32xf32> to vector<7x32xf32>
    %38 = vector.shape_cast %35 : vector<7x32xf32> to vector<1x7x32xf32>
    tpu.vector_store %arg4[%c0_16, %c0_17, %c0_18], %38 {strides = array<i32>} : memref<2x7x32xf32, #tpu.memory_space<vmem>>, vector<1x7x32xf32>,
    %39 = vector.extract_strided_slice %7 {offsets = [8, 0], sizes = [8, 32], strides = [1, 1]} : vector<16x32xbf16> to vector<8x32xbf16>
    %40 = vector.extract_strided_slice %4 {offsets = [9, 0], sizes = [7, 1], strides = [1, 1]} : vector<16x1xf32> to vector<7x1xf32>
    %41 = vector.extract_strided_slice %6 {offsets = [0, 8], sizes = [1, 8], strides = [1, 1]} : vector<1x16xf32> to vector<1x8xf32>
    %42 = vector.broadcast %40 : vector<7x1xf32> to vector<7x8xf32>
    %43 = vector.broadcast %41 : vector<1x8xf32> to vector<7x8xf32>
    %44 = arith.addf %42, %43 : vector<7x8xf32>
    %cst_19 = arith.constant 0.000000e+00 : f32
    %45 = vector.broadcast %cst_19 : f32 to vector<7x8xf32>
    %46 = arith.cmpf ogt, %44, %45 : vector<7x8xf32>
    %cst_20 = arith.constant 0.00999999977 : f32
    %47 = vector.broadcast %cst_20 : f32 to vector<7x8xf32>
    %48 = arith.mulf %47, %44 : vector<7x8xf32>
    %49 = arith.select %46, %44, %48 : vector<7x8xi1>, vector<7x8xf32>
    %cst_21 = arith.constant dense<0xFF800000> : vector<7xf32>
    %50 = vector.multi_reduction <maximumf>, %49, %cst_21 [1] : vector<7x8xf32> to vector<7xf32>
    %51 = vector.shape_cast %50 : vector<7xf32> to vector<7x1xf32>
    %52 = vector.broadcast %51 : vector<7x1xf32> to vector<7x8xf32>
    %53 = arith.subf %49, %52 : vector<7x8xf32>
    %54 = math.exp %53 : vector<7x8xf32>
    %cst_22 = arith.constant dense<0.000000e+00> : vector<7xf32>
    %55 = vector.multi_reduction <add>, %54, %cst_22 [1] : vector<7x8xf32> to vector<7xf32>
    %56 = vector.shape_cast %55 : vector<7xf32> to vector<7x1xf32>
    %57 = tpu.reciprocal %56 {approx = true} : vector<7x1xf32> -> vector<7x1xf32>
    %58 = vector.broadcast %57 : vector<7x1xf32> to vector<7x8xf32>
    %59 = arith.mulf %54, %58 : vector<7x8xf32>
    %60 = arith.truncf %59 : vector<7x8xf32> to vector<7x8xbf16>
    %cst_23 = arith.constant dense<0.000000e+00> : vector<7x32xf32>
    %61 = tpu.matmul %60, %39, %cst_23 {dimension_numbers = #tpu.dot_dimension_numbers<[1], [0], [0], [1], [0, 0, 1, 1], [], []>} : vector<7x8xbf16>, vector<8x32xbf16>, vector<7x32xf32> -> vector<7x32xf32>
    %cst_24 = arith.constant 0.000000e+00 : f32
    %62 = vector.broadcast %cst_24 : f32 to vector<7x32xf32>
    %63 = arith.cmpf ogt, %61, %62 : vector<7x32xf32>
    %cst_25 = arith.constant 0.00999999977 : f32
    %64 = vector.broadcast %cst_25 : f32 to vector<7x32xf32>
    %65 = arith.mulf %64, %61 : vector<7x32xf32>
    %66 = arith.select %63, %61, %65 : vector<7x32xi1>, vector<7x32xf32>
    %c1 = arith.constant 1 : index
    %c0_26 = arith.constant 0 : index
    %c0_27 = arith.constant 0 : index
    %67 = vector.load %arg4[%c1, %c0_26, %c0_27] : memref<2x7x32xf32, #tpu.memory_space<vmem>>, vector<1x7x32xf32>
    %68 = vector.shape_cast %67 : vector<1x7x32xf32> to vector<7x32xf32>
    %69 = vector.shape_cast %66 : vector<7x32xf32> to vector<1x7x32xf32>
    tpu.vector_store %arg4[%c1, %c0_26, %c0_27], %69 {strides = array<i32>} : memref<2x7x32xf32, #tpu.memory_space<vmem>>, vector<1x7x32xf32>,
    return
  }
}

</mosaic_0001>

<bundles_post_ra>
// kernel: att0_1_forward.1
= control target key start
LH: loop header
LB: loop body
LE: loop exit
PB: predicated region body
PF: predicated region fallthrough
CT: control target
= control target key end

     0   :  { %v270_v2 = vmov 0   ;;  %vm41_vm0 = vcmask 261120   ;;  %vm118_vm2 = vcmask 64513   ;;  %vm173_vm4 = vcmask 130113   ;;  %s271_s24 = smov 120   ;;  %s334_s2 = inlined_call_operand.vmem [shape: bf16[32,1], index: 2, kind: input, shape index: {}]   ;;  %s335_s0 = inlined_call_operand.vmem [shape: bf16[16,32], index: 0, kind: input, shape index: {}]   ;;  %s336_s3 = inlined_call_operand.vmem [shape: bf16[1,32], index: 3, kind: input, shape index: {}]   ;;  %s337_s1 = inlined_call_operand.vmem [shape: bf16[32,32], index: 1, kind: input, shape index: {}]   ;;  %s338_s4 = inlined_call_operand.vmem [shape: f32[2,7,32], index: 4, kind: output, shape index: {}]  }
   0x1   :  { %v257_v0 = vld [vmem:[%s334_s2 + $0x8] sm:$0xff]  ;;  %v253_v1 = vld [vmem:[%s335_s0] sm:$0xff]  ;;  %261 = vset.pattern.permute.xlu1 %v270_v2  ;;  %260 = vset.pattern.permute.xlu0 %v270_v2  ;;  %vm142_vm5 = vcmask 1043456   ;;  %vm138_vm6 = vcmask 64512   ;;  %vm162_vm8 = vcmask 260096  }
   0x2   :  { %81 = vmatpush.bf16.msra.mxu1 %v257_v0  ;;  %v256_v3 = vld [vmem:[%s334_s2] sm:$0xff]  ;;  %v43_v4 = vsel %vm41_vm0, %v253_v1, 0  ;;  %v255_v21 = vld [vmem:[%s337_s1 + $0x8] sm:$0xff] }
   0x3   :  { %100 = vmatpush.bf16.xpose.msra.mxu2 %v43_v4  ;;  %v89_v5 = vld [vmem:[%s336_s3] sm:$0x1]  ;;  %51 = vmatpush.bf16.msra.mxu0 %v255_v21 }
   0x4   :  { %v254_v22 = vld [vmem:[%s337_s1] sm:$0xff] }
   0x6   :  { %82 = vmatpush.bf16.msra.mxu1 %v256_v3 }
   0x7   :  { %52 = vmatpush.bf16.msra.mxu0 %v254_v22 }
   0x9   :  { %248 = vmatmul.msk.bf16.vlgmr.msra.gmra.mxu1 %vm41_vm0, %v253_v1 }
   0xa   :  { %249 = vmatmul.msk.bf16.vlgmr.msra.gmra.mxu2 %vm41_vm0, %v89_v5  ;;  %239 = vmatmul.msk.bf16.vlgmr.msra.gmra.mxu0 %vm41_vm0, %v253_v1 }
  0x86   :  { %v84_v6 = vpop.f32.mrf.mxu1 }
  0x87   :  { %110 = vperm.xlu1 %261, %v84_v6   ;;  %v54_v34 = vpop.f32.mrf.mxu0 }
  0x88   :  { %v106_v35 = vpack.c.bf16 %v54_v34, %v54_v34 }
  0x8a   :  { %v144_v36 = vsel %vm142_vm5, %v106_v35, 0 }
  0x8b   :  { %153 = vmatpush.bf16.msra.mxu3 %v144_v36 }
  0x8d   :  { %v102_v7 = vpop.f32.mrf.mxu2 }
  0x8e   :  { %v86_v8 = vpop.f32.mrf.mxu1  ;;  %v113_v10 = vperm.slane %v102_v7, 0 }
  0x8f   :  { %166 = vperm.xlu0 %260, %v86_v8   ;;  %v56_v53 = vpop.f32.mrf.mxu0 }
  0x90   :  { %v107_v54 = vpack.c.bf16 %v56_v53, %v56_v53 }
  0x92   :  { %v203_v55 = vsel %vm142_vm5, %v107_v54, 0 }
  0x93   :  { %212 = vmatpush.bf16.msrb.mxu3 %v203_v55 }
  0x95   :  { %v104_v9 = vpop.f32.mrf.mxu2 }
  0xf9   :  { %v111_v11 = vpop.permute.xlu1 %110 }
  0xfa   :  { %v114_v12 = vadd.f32 %v113_v10, %v111_v11 }
  0xfc   :  { %v116_v13 = vmul.f32 0.01, %v114_v12  ;;  %vm115_vm1 = vcmp.gt.f32.partialorder %v114_v12, 0.0 }
  0xfe   :  { %v117_v14 = vsel %vm115_vm1, %v114_v12, %v116_v13 }
  0xff   :  { %v119_v15 = vsel %vm118_vm2, %v117_v14, -inf }
 0x100   :  { %120 = vmax.xlane.f32.xlu2 %v119_v15 }
 0x101   :  { %v167_v16 = vpop.permute.xlu0 %166 }
 0x102   :  { %v169_v17 = vadd.f32 %v167_v16, %v113_v10 }
 0x104   :  { %v171_v18 = vmul.f32 0.01, %v169_v17  ;;  %vm170_vm3 = vcmp.gt.f32.partialorder %v169_v17, 0.0 }
 0x106   :  { %v172_v19 = vsel %vm170_vm3, %v169_v17, %v171_v18 }
 0x107   :  { %v174_v20 = vsel %vm173_vm4, %v172_v19, -inf }
 0x108   :  { %175 = vmax.xlane.f32.xlu0 %v174_v20 }
 0x173   :  { %v121_v27 = vpop.xlane.xlu2 %120 }
 0x174   :  { %v122_v28 = vsub.f32 %v117_v14, %v121_v27 }
 0x176   :  { %v123_v29 = vmul.f32 1.442695, %v122_v28 }
 0x17b   :  { %v176_v23 = vpop.xlane.xlu0 %175 }
 0x17c   :  { %v177_v24 = vsub.f32 %v172_v19, %v176_v23 }
 0x17e   :  { %v178_v25 = vmul.f32 1.442695, %v177_v24 }
 0x180   :  { %262 = vpow2.f32 %v178_v25 }
 0x181   :  { %264 = vpow2.f32 %v123_v29 }
 0x186   :  { %v263_v26 = vpop.eup %262 }
 0x187   :  { %181 = vrot.lane.b32.xlu1 %v263_v26, %s271_s24  ;;  %v265_v30 = vpop.eup %264 }
 0x188   :  { %v125_v31 = vsel %vm118_vm2, %v265_v30, 0.0 }
 0x1b1   :  { %126 = vadd.xlane.f32.xlu1 %v125_v31 }
 0x1f9   :  { %v182_v32 = vpop.permute.xlu1 %181 }
 0x1fa   :  { %v184_v33 = vsel %vm118_vm2, %v182_v32, 0.0 }
 0x1fb   :  { %185 = vadd.xlane.f32.xlu2 %v184_v33 }
 0x224   :  { %v127_v37 = vpop.xlane.xlu1 %126 }
 0x225   :  { %266 = vrcp.f32 %v127_v37 }
 0x22b   :  { %v267_v38 = vpop.eup %266 }
 0x22c   :  { %v129_v39 = vmul.f32 %v267_v38, %v265_v30 }
 0x22e   :  { %v130_v40 = vpack.c.bf16 %v129_v39, %v129_v39 }
 0x230   :  { %v134_v41 = vshll.u32 %v130_v40, 16  ;;  %v132_v42 = vshrl.u32 %v130_v40, 16 }
 0x232   :  { %v136_v43 = vrot.slane %v134_v41, 1 }
 0x234   :  { %v137_v44 = vor.u32 %v136_v43, %v132_v42 }
 0x236   :  { %250 = vmatmul.msk.bf16.vlgmr.msra.gmra.mxu3 %vm138_vm6, %v137_v44 }
 0x26e   :  { %v186_v45 = vpop.xlane.xlu2 %185 }
 0x26f   :  { %268 = vrcp.f32 %v186_v45 }
 0x275   :  { %v269_v46 = vpop.eup %268 }
 0x276   :  { %v188_v47 = vmul.f32 %v269_v46, %v263_v26 }
 0x278   :  { %v189_v48 = vpack.c.bf16 %v188_v47, %v188_v47 }
 0x27a   :  { %v193_v49 = vshll.u32 %v189_v48, 16  ;;  %v191_v50 = vshrl.u32 %v189_v48, 16 }
 0x27c   :  { %v195_v51 = vrot.slane %v193_v49, 1 }
 0x27e   :  { %v196_v52 = vor.u32 %v195_v51, %v191_v50 }
 0x280   :  { %197 = vrot.lane.b32.xlu2 %v196_v52, %s271_s24 }
 0x2b9   :  { %v155_v56 = vpop.f32.mrf.mxu3 }
 0x2ba   :  { %vm159_vm7 = vcmp.gt.f32.partialorder %v155_v56, 0.0  ;;  %v160_v57 = vmul.f32 0.01, %v155_v56 }
 0x2bc   :  { %v161_v58 = vsel %vm159_vm7, %v155_v56, %v160_v57 }
 0x2bd   :  { %163 = vst.msk [vmem:[%s338_s4] sm:$0x7f] %vm162_vm8, %v161_v58 }
 0x2c1   :  { %v157_v59 = vpop.f32.mrf.mxu3 }
 0x2da   :  { %v198_v60 = vpop.permute.xlu2 %197 }
 0x2db   :  { %251 = vmatmul.msk.bf16.vlgmr.msrb.gmra.mxu3 %vm138_vm6, %v198_v60 }
 0x35e   :  { %v214_v61 = vpop.f32.mrf.mxu3 }
 0x35f   :  { %vm218_vm9 = vcmp.gt.f32.partialorder %v214_v61, 0.0  ;;  %v219_v62 = vmul.f32 0.01, %v214_v61 }
 0x361   :  { %v220_v63 = vsel %vm218_vm9, %v214_v61, %v219_v62 }
 0x362   :  { %252 = vst.msk [vmem:[%s338_s4 + $0x8] sm:$0x7f] %vm162_vm8, %v220_v63 }
 0x366   :  { %v216_v0 = vpop.f32.mrf.mxu3 }

</bundles_post_ra>
